<compile_context>
chip_gen: v6e
topology: v6e:2x2x1
jax: 0.10.0
libtpu: 0.0.40
codegen_flags: <defaults>
</compile_context>

<pallas_src>
import jax
import jax.numpy as jnp
from jax import lax
from jax.experimental import pallas as pl
from jax.experimental.pallas import tpu as pltpu

V = 3                      # num_variables
_NROWS = 16                # 12 depth-1 power rows + 3 depth-2 power rows + 1 ones row
_F1ROWS = 8                # 4 depth-1 node rows, padded to one sublane tile
_TM_LARGE = 4096           # lane-tile width for large batches (per-step VMEM ~ a few 100 KiB)


def nested_formula_kernel(psel_ref, wf1_ref, w2_ref, x_ref, o_ref):
    """One lane-major batch tile.

    psel_ref : VMEM (16, V)   power-selection matrix  (row 15 = zeros -> exp gives ones)
    wf1_ref  : VMEM (8, 16)   depth-1 lambdas + constants (rows 4..7 zero)
    w2_ref   : VMEM (8, 16)   top-node lambdas picking rows 12..14, ones row, zeros
    x_ref    : VMEM (V, TM)   samples, batch on the lane axis
    o_ref    : VMEM (1, TM)   output
    """
    logx = jnp.log(x_ref[...])                                   # (V, TM)  single EUP log pass

    # Stage every p*log(x_i) with one tiny MXU matmul, then ONE fused EUP exp.
    staged = jnp.dot(psel_ref[...], logx,
                     preferred_element_type=jnp.float32,
                     precision=lax.Precision.HIGHEST)            # (16, TM)
    e = jnp.exp(staged)                                          # rows 0..14: x_i**p, row 15: 1

    # All four depth-1 nodes at once (constants folded through the ones row).
    f1 = jnp.dot(wf1_ref[...], e,
                 preferred_element_type=jnp.float32,
                 precision=lax.Precision.HIGHEST)                # (8, TM): f1_0..f1_3, 0, 0, 0, 0

    # Top-node multipliers: lam2[i]*x_i^pow2[i] (rows 0..2), 1 (row 3), 0 (rows 4..7).
    g = jnp.dot(w2_ref[...], e,
                preferred_element_type=jnp.float32,
                precision=lax.Precision.HIGHEST)                 # (8, TM)

    # out = sum_i lam2[i]*x_i^pow2[i]*f1_i + f1_3   (dense multiply + sublane reduce)
    o_ref[...] = jnp.sum(f1 * g, axis=0, keepdims=True).astype(o_ref.dtype)


def _choose_tm(n):
    """Lane-tile width: one step for small batches, fixed 4096-lane tiles otherwise."""
    n128 = pl.cdiv(n, 128) * 128
    return n128 if n128 <= _TM_LARGE else _TM_LARGE


@jax.jit
def nested_formula(x, lam1, pow1, c, lam2, pow2):
    """x: (N, V) batch-major (PyTorch convention). Returns (N, 1) float32."""
    n, v = x.shape
    assert v == V
    f32 = jnp.float32
    lam1 = lam1.astype(f32); pow1 = pow1.astype(f32); c = c.astype(f32)
    lam2 = lam2.astype(f32); pow2 = pow2.astype(f32)

    # --- tiny structural parameter matrices (built once per call, negligible cost) ---
    # PSEL[j*V+i, i] = pow1[j, i];  PSEL[12+i, i] = pow2[i];  PSEL[15, :] = 0.
    rows12 = jnp.arange((V + 1) * V)
    cols12 = jnp.tile(jnp.arange(V), V + 1)
    psel = jnp.zeros((_NROWS, V), f32)
    psel = psel.at[rows12, cols12].set(pow1.reshape(-1))
    psel = psel.at[(V + 1) * V + jnp.arange(V), jnp.arange(V)].set(pow2.reshape(-1))

    # WF1[j, j*V+i] = lam1[j, i];  WF1[j, 15] = c_j;  rows 4..7 zero.
    wf1 = jnp.zeros((_F1ROWS, _NROWS), f32)
    wf1 = wf1.at[jnp.repeat(jnp.arange(V + 1), V), rows12].set(lam1.reshape(-1))
    wf1 = wf1.at[jnp.arange(V + 1), _NROWS - 1].set(c.reshape(-1))

    # W2[i, 12+i] = lam2[i];  W2[3, 15] = 1;  rows 4..7 zero.
    w2 = jnp.zeros((_F1ROWS, _NROWS), f32)
    w2 = w2.at[jnp.arange(V), (V + 1) * V + jnp.arange(V)].set(lam2.reshape(-1))
    w2 = w2.at[V, _NROWS - 1].set(1.0)

    # Layout plumbing only: batch onto the lane axis. No explicit padding -- the
    # ragged last block is covered by the grid; its OOB lanes are lane-independent
    # and masked on the output store.
    x_t = jnp.transpose(x).astype(f32)                           # (V, N) lane-major

    tm = _choose_tm(n)
    grid = (pl.cdiv(n, tm),)

    out = pl.pallas_call(
        nested_formula_kernel,
        out_shape=jax.ShapeDtypeStruct((1, n), f32),
        grid=grid,
        in_specs=[
            pl.BlockSpec((_NROWS, V), lambda i: (0, 0)),         # PSEL (constant block)
            pl.BlockSpec((_F1ROWS, _NROWS), lambda i: (0, 0)),   # WF1  (constant block)
            pl.BlockSpec((_F1ROWS, _NROWS), lambda i: (0, 0)),   # W2   (constant block)
            pl.BlockSpec((V, tm), lambda i: (0, i)),             # x, lane-major tile
        ],
        out_specs=pl.BlockSpec((1, tm), lambda i: (0, i)),       # lane-dense (1, TM) store
        compiler_params=pltpu.CompilerParams(
            dimension_semantics=("parallel",)),
    )(psel, wf1, w2, x_t)

    return out.reshape(n, 1)


def nested_formula_ref(x, lam1, pow1, c, lam2, pow2):
    """Pure-JAX reference mirroring the PyTorch recursion exactly."""
    xp = x[:, None, :] ** pow1[None, :, :]                           # (N, V+1, V)
    f1 = jnp.sum(lam1[None, :, :] * xp, axis=-1) + c.reshape(-1)[None, :]   # (N, V+1)
    top = jnp.sum(lam2.reshape(-1) * (x ** pow2.reshape(-1)) * f1[:, :V],
                  axis=-1, keepdims=True)
    return top + f1[:, V:V + 1]


if __name__ == "__main__":
    key = jax.random.PRNGKey(0)
    k_x, k_l1, k_p1, k_c, k_l2, k_p2 = jax.random.split(key, 6)

    # Parameters (torch init was 2*randn for every lambda/power and depth-0 constant).
    lam1 = 2.0 * jax.random.normal(k_l1, (V + 1, V), dtype=jnp.float32)
    pow1 = 2.0 * jax.random.normal(k_p1, (V + 1, V), dtype=jnp.float32)
    c = 2.0 * jax.random.normal(k_c, (1, V + 1), dtype=jnp.float32)
    lam2 = 2.0 * jax.random.normal(k_l2, (1, V), dtype=jnp.float32)
    pow2 = 2.0 * jax.random.normal(k_p2, (1, V), dtype=jnp.float32)

    # Positive inputs (for x > 0 the exp(p*log x) formulation equals torch's pow).
    N = 256
    x = jax.random.uniform(k_x, (N, V), dtype=jnp.float32, minval=0.5, maxval=2.0)

    out = jax.block_until_ready(nested_formula(x, lam1, pow1, c, lam2, pow2))
    ref = nested_formula_ref(x, lam1, pow1, c, lam2, pow2)
    assert out.shape == (N, 1)
    assert jnp.allclose(out, ref, rtol=1e-3, atol=1e-2), (
        f"max abs err = {jnp.max(jnp.abs(out - ref))}")

    # Ragged batch (not a multiple of 128 lanes) exercises the partial-block path.
    N2 = 200
    x2 = jax.random.uniform(jax.random.fold_in(key, 123), (N2, V),
                            dtype=jnp.float32, minval=0.5, maxval=2.0)
    out2 = jax.block_until_ready(nested_formula(x2, lam1, pow1, c, lam2, pow2))
    ref2 = nested_formula_ref(x2, lam1, pow1, c, lam2, pow2)
    assert out2.shape == (N2, 1)
    assert jnp.allclose(out2, ref2, rtol=1e-3, atol=1e-2), (
        f"max abs err = {jnp.max(jnp.abs(out2 - ref2))}")

    print("KERNEL_OK")
</pallas_src>

<mosaic_0001>
module attributes {stable_mosaic.version = 11 : i64} {
  func.func @nested_formula_kernel(%arg0: i32, %arg1: memref<16x3xf32, #tpu.memory_space<vmem>>, %arg2: memref<8x16xf32, #tpu.memory_space<vmem>>, %arg3: memref<8x16xf32, #tpu.memory_space<vmem>>, %arg4: memref<3x256xf32, #tpu.memory_space<vmem>>, %arg5: memref<1x256xf32, #tpu.memory_space<vmem>>) attributes {dimension_semantics = [#tpu.dimension_semantics<parallel>], iteration_bounds = array<i64: 1>, scalar_prefetch = 0 : i64, scratch_operands = 0 : i64, tpu.core_type = #tpu.core_type<tc>, window_params = [{pipeline_mode = #tpu.pipeline_mode<synchronous>, transform_indices = @transform_0, window_bounds = array<i64: 16, 3>}, {pipeline_mode = #tpu.pipeline_mode<synchronous>, transform_indices = @transform_1, window_bounds = array<i64: 8, 16>}, {pipeline_mode = #tpu.pipeline_mode<synchronous>, transform_indices = @transform_2, window_bounds = array<i64: 8, 16>}, {transform_indices = @transform_3, window_bounds = array<i64: 3, 256>}, {transform_indices = @transform_4, window_bounds = array<i64: 1, 256>}]} {
    %c0 = arith.constant 0 : index
    %c0_0 = arith.constant 0 : index
    %0 = vector.load %arg4[%c0, %c0_0] : memref<3x256xf32, #tpu.memory_space<vmem>>, vector<3x256xf32>
    %1 = math.log %0 : vector<3x256xf32>
    %c0_1 = arith.constant 0 : index
    %c0_2 = arith.constant 0 : index
    %2 = vector.load %arg1[%c0_1, %c0_2] : memref<16x3xf32, #tpu.memory_space<vmem>>, vector<16x3xf32>
    %cst = arith.constant dense<0.000000e+00> : vector<16x256xf32>
    %3 = tpu.matmul %2, %1, %cst {dimension_numbers = #tpu.dot_dimension_numbers<[1], [0], [0], [1], [0, 0, 1, 1], [], []>, precision = #tpu.contract_precision<fp32>} : vector<16x3xf32>, vector<3x256xf32>, vector<16x256xf32> -> vector<16x256xf32>
    %4 = math.exp %3 : vector<16x256xf32>
    %c0_3 = arith.constant 0 : index
    %c0_4 = arith.constant 0 : index
    %5 = vector.load %arg2[%c0_3, %c0_4] : memref<8x16xf32, #tpu.memory_space<vmem>>, vector<8x16xf32>
    %cst_5 = arith.constant dense<0.000000e+00> : vector<8x256xf32>
    %6 = tpu.matmul %5, %4, %cst_5 {dimension_numbers = #tpu.dot_dimension_numbers<[1], [0], [0], [1], [0, 0, 1, 1], [], []>, precision = #tpu.contract_precision<fp32>} : vector<8x16xf32>, vector<16x256xf32>, vector<8x256xf32> -> vector<8x256xf32>
    %c0_6 = arith.constant 0 : index
    %c0_7 = arith.constant 0 : index
    %7 = vector.load %arg3[%c0_6, %c0_7] : memref<8x16xf32, #tpu.memory_space<vmem>>, vector<8x16xf32>
    %cst_8 = arith.constant dense<0.000000e+00> : vector<8x256xf32>
    %8 = tpu.matmul %7, %4, %cst_8 {dimension_numbers = #tpu.dot_dimension_numbers<[1], [0], [0], [1], [0, 0, 1, 1], [], []>, precision = #tpu.contract_precision<fp32>} : vector<8x16xf32>, vector<16x256xf32>, vector<8x256xf32> -> vector<8x256xf32>
    %9 = arith.mulf %6, %8 : vector<8x256xf32>
    %cst_9 = arith.constant dense<0.000000e+00> : vector<256xf32>
    %10 = vector.multi_reduction <add>, %9, %cst_9 [0] : vector<8x256xf32> to vector<256xf32>
    %11 = vector.shape_cast %10 : vector<256xf32> to vector<1x256xf32>
    %c0_10 = arith.constant 0 : index
    %c0_11 = arith.constant 0 : index
    %12 = vector.load %arg5[%c0_10, %c0_11] : memref<1x256xf32, #tpu.memory_space<vmem>>, vector<1x256xf32>
    tpu.vector_store %arg5[%c0_10, %c0_11], %11 {strides = array<i32>} : memref<1x256xf32, #tpu.memory_space<vmem>>, vector<1x256xf32>,
    return
  }
  func.func @transform_0(%arg0: i32) -> (i32, i32) {
    %c0_i32 = arith.constant 0 : i32
    %c0_i32_0 = arith.constant 0 : i32
    %c0_i32_1 = arith.constant 0 : i32
    return %c0_i32, %c0_i32_0 : i32, i32
  }
  func.func @transform_1(%arg0: i32) -> (i32, i32) {
    %c0_i32 = arith.constant 0 : i32
    %c0_i32_0 = arith.constant 0 : i32
    %c0_i32_1 = arith.constant 0 : i32
    return %c0_i32, %c0_i32_0 : i32, i32
  }
  func.func @transform_2(%arg0: i32) -> (i32, i32) {
    %c0_i32 = arith.constant 0 : i32
    %c0_i32_0 = arith.constant 0 : i32
    %c0_i32_1 = arith.constant 0 : i32
    return %c0_i32, %c0_i32_0 : i32, i32
  }
  func.func @transform_3(%arg0: i32) -> (i32, i32) {
    %c0_i32 = arith.constant 0 : i32
    %c0_i32_0 = arith.constant 0 : i32
    return %c0_i32, %arg0 : i32, i32
  }
  func.func @transform_4(%arg0: i32) -> (i32, i32) {
    %c0_i32 = arith.constant 0 : i32
    %c0_i32_0 = arith.constant 0 : i32
    return %c0_i32, %arg0 : i32, i32
  }
}

</mosaic_0001>

<bundles_post_ra>
// kernel: nested_formula.1
= control target key start
LH: loop header
LB: loop body
LE: loop exit
PB: predicated region body
PF: predicated region fallthrough
CT: control target
= control target key end

     0   :  { %vm25_vm0 = vcmask 23552   ;;  %v1636_v2 = vmov 0.0   ;;  %s1797_s0 = inlined_call_operand.vmem [shape: f32[16,3], index: 0, kind: input, shape index: {}]   ;;  %s1798_s1 = inlined_call_operand.vmem [shape: f32[8,16], index: 1, kind: input, shape index: {}]   ;;  %s1799_s2 = inlined_call_operand.vmem [shape: f32[8,16], index: 2, kind: input, shape index: {}]   ;;  %s1800_s3 = inlined_call_operand.vmem [shape: f32[3,256], index: 3, kind: input, shape index: {}]   ;;  %s1801_s4 = inlined_call_operand.hbm [shape: f32[1,256], index: 4, kind: output, shape index: {}]  }
   0x1   :  { %v18_v0 = vld [vmem:[%s1800_s3] sm:$0x77]  ;;  %103 = vmatprep.mubr.f32.mxu0 %v1636_v2  ;;  %200 = vmatprep.mubr.f32.mxu1 %v1636_v2 }
   0x2   :  { %v21_v1 = vld [vmem:[%s1797_s0] sm:$0xff]  ;;  %1604 = vlog2.f32 %v18_v0 }
   0x3   :  { %v27_v3 = vsel %vm25_vm0, %v21_v1, 0 }
   0x4   :  { %9 = vsyncpa [#allocation3], 0  ;;  %v22_v4 = vld [vmem:[%s1797_s0 + $0x8] sm:$0xff]  ;;  %v104_v5 = vand.u32 4294901760, %v27_v3  ;;  %vm32_vm1 = vcmask 1042432   ;;  %vm560_vm2 = vcmask 130048  }
   0x5   :  { %v30_v6 = vsel %vm25_vm0, %v22_v4, 0 }
   0x6   :  { %v105_v7 = vsub.f32 %v27_v3, %v104_v5  ;;  %v115_v8 = vand.u32 4294901760, %v30_v6 }
   0x8   :  { %v106_v9 = vand.u32 4294901760, %v105_v7  ;;  %v116_v10 = vsub.f32 %v30_v6, %v115_v8 }
   0xa   :  { %v107_v13 = vsub.f32 %v105_v7, %v106_v9  ;;  %v117_v14 = vand.u32 4294901760, %v116_v10 }
   0xc   :  { %v108_v20 = vand.u32 4294901760, %v107_v13  ;;  %v118_v21 = vsub.f32 %v116_v10, %v117_v14 }
   0xe   :  { %v119_v25 = vand.u32 4294901760, %v118_v21 }
   0xf   :  { %v1605_v11 = vpop.eup %1604 }
  0x10   :  { %v20_v12 = vmul.f32 0.6931472, %v1605_v11 }
  0x12   :  { %v24_v15 = vcombine.high %v20_v12, %v20_v12  ;;  %v33_v16 = vsel %vm32_vm1, %v20_v12, 0  ;;  %v559_v12 = vld [vmem:[%s1798_s1] sm:$0xff] }
  0x13   :  { %v69_v17 = vand.u32 4294901760, %v33_v16 }
  0x14   :  { %v35_v18 = vsel %vm32_vm1, %v24_v15, 0 }
  0x15   :  { %v67_v19 = vand.u32 4294901760, %v35_v18  ;;  %v163_v22 = vsub.f32 %v33_v16, %v69_v17  ;;  %v562_v16 = vsel %vm560_vm2, %v559_v12, 0 }
  0x17   :  { %68 = vmatprep.subr.mxu0 %v67_v19  ;;  %v157_v23 = vsub.f32 %v35_v18, %v67_v19  ;;  %v164_v24 = vand.u32 4294901760, %v163_v22  ;;  %v1691_v18 = vand.u32 4294901760, %v562_v16 }
  0x18   :  { %70 = vmatpush1.msra.mxu0 %v69_v17 }
  0x19   :  { %109 = vmatmul.mubr.f32.vlgmr.msra.gmra.mxu0 %v108_v20  ;;  %v158_v26 = vand.u32 4294901760, %v157_v23  ;;  %v165_v27 = vsub.f32 %v163_v22, %v164_v24  ;;  %247 = vmatprep.subr.mxu0 %v157_v23 }
  0x1a   :  { %114 = vmatprep.mubr.f32.mxu0 %v1636_v2  ;;  %250 = vmatpush1.msra.mxu0 %v163_v22 }
  0x1b   :  { %v159_v28 = vsub.f32 %v157_v23, %v158_v26  ;;  %418 = vmatprep.subr.mxu0 %v158_v26  ;;  %v166_v29 = vand.u32 4294901760, %v165_v27  ;;  %v1055_v26 = vld [vmem:[%s1799_s2] sm:$0xff]  ;;  %s1638_s2 = smov [#allocation2]  }
  0x1c   :  { %s1593_s22 = sshll.u32 %s1638_s2, 4  ;;  %s1594_s22 = int_to_ptr.vmem [resolvable:$true] %s1593_s22 }
  0x1d   :  { %120 = vmatmul.mubr.f32.gmra.mxu0 %v119_v25  ;;  %v160_v30 = vand.u32 4294901760, %v159_v28  ;;  %s1614_s23 = scalar_lea.vmem %s1594_s22, 32  ;;  %p1619_p1 = scmp.lt.s32.totalorder %s1594_s22, %s1594_s22 }
  0x1e   :  { %283 = vmatprep.mubr.f32.mxu0 %v1636_v2  ;;  %p1615_p0 = scmp.ne.s32.totalorder %s1594_s22, %s1614_s23  ;;  %p1620_p2 = scmp.lt.s32.totalorder %s1614_s23, %s1614_s23 }
  0x1f   :  { %161 = vmatprep.subr.mxu1 %v160_v30 }
  0x20   :  { %167 = vmatpush1.msra.mxu1 %v166_v29  ;;  %p1621_p3 = por %p1620_p2, %p1619_p1 }
  0x21   :  { %202 = vmatmul.mubr.f32.vlgmr.msra.gmra.mxu1 %v104_v5  ;;  %286 = vmatmul.mubr.f32.vlgmr.msra.gmra.mxu0 %v105_v7 }
  0x22   :  { %207 = vmatprep.mubr.f32.mxu1 %v1636_v2  ;;  %331 = vmatprep.subr.mxu1 %v67_v19  ;;  %p1622_p4 = pnand %p1621_p3, %p1615_p0 }
  0x23   :  { %291 = vmatprep.mubr.f32.mxu0 %v1636_v2  ;;  %333 = vmatpush1.msra.mxu1 %v69_v17 }
  0x24   :  { %422 = vmatpush1.msra.mxu0 %v164_v24  ;;  %501 = vmatprep.subr.mxu1 %v67_v19  ;;  %v1694_v19 = vsub.f32 %v562_v16, %v1691_v18 }
  0x25   :  { %209 = vmatmul.mubr.f32.gmra.mxu1 %v115_v8  ;;  %294 = vmatmul.mubr.f32.gmra.mxu0 %v116_v10 }
  0x26   :  { %366 = vmatprep.mubr.f32.mxu1 %v1636_v2  ;;  %455 = vmatprep.mubr.f32.mxu0 %v1636_v2  ;;  %v635_v21 = vand.u32 4294901760, %v1694_v19 }
  0x28   :  { %v636_v28 = vsub.f32 %v1694_v19, %v635_v21 }
  0x29   :  { %370 = vmatmul.mubr.f32.vlgmr.msra.gmra.mxu1 %v106_v9  ;;  %457 = vmatmul.mubr.f32.vlgmr.msra.gmra.mxu0 %v104_v5 }
  0x2a   :  { %375 = vmatprep.mubr.f32.mxu1 %v1636_v2  ;;  %462 = vmatprep.mubr.f32.mxu0 %v1636_v2 }
  0x2b   :  { %503 = vmatpush1.msra.mxu1 %v69_v17 }
  0x2d   :  { %379 = vmatmul.mubr.f32.gmra.mxu1 %v117_v14  ;;  %464 = vmatmul.mubr.f32.gmra.mxu0 %v115_v8 }
  0x2e   :  { %536 = vmatprep.mubr.f32.mxu1 %v1636_v2  ;;  %632 = vmatprep.mubr.f32.mxu0 %v1636_v2 }
  0x31   :  { %538 = vmatmul.mubr.f32.vlgmr.msra.gmra.mxu1 %v104_v5 }
  0x32   :  { %543 = vmatprep.mubr.f32.mxu1 %v1636_v2 }
  0x35   :  { %545 = vmatmul.mubr.f32.gmra.mxu1 %v115_v8 }
  0x36   :  { %728 = vmatprep.mubr.f32.mxu1 %v1636_v2 }
  0xd9   :  { %v110_v31 = vpop.f32.mrf.mxu0 }
  0xdb   :  { %v112_v32 = vpop.f32.mrf.mxu0 }
  0xdd   :  { %v121_v33 = vpop.f32.mrf.mxu0 }
  0xdf   :  { %v123_v34 = vpop.f32.mrf.mxu0 }
  0xe1   :  { %v203_v35 = vpop.f32.mrf.mxu1  ;;  %v287_v36 = vpop.f32.mrf.mxu0 }
  0xe2   :  { %v204_v41 = vadd.f32 %v203_v35, %v110_v31 }
  0xe3   :  { %v205_v37 = vpop.f32.mrf.mxu1  ;;  %v289_v38 = vpop.f32.mrf.mxu0 }
  0xe4   :  { %v206_v44 = vadd.f32 %v205_v37, %v112_v32  ;;  %v288_v47 = vadd.f32 %v287_v36, %v204_v41  ;;  %v637_v36 = vand.u32 4294901760, %v636_v28 }
  0xe5   :  { %v210_v39 = vpop.f32.mrf.mxu1  ;;  %v295_v40 = vpop.f32.mrf.mxu0 }
  0xe6   :  { %v211_v48 = vadd.f32 %v210_v39, %v121_v33  ;;  %v290_v51 = vadd.f32 %v289_v38, %v206_v44 }
  0xe7   :  { %v212_v42 = vpop.f32.mrf.mxu1  ;;  %v297_v43 = vpop.f32.mrf.mxu0 }
  0xe8   :  { %v213_v52 = vadd.f32 %v212_v42, %v123_v34  ;;  %v296_v55 = vadd.f32 %v295_v40, %v211_v48  ;;  %v1057_v34 = vsel %vm560_vm2, %v1055_v26, 0 }
  0xe9   :  { %v371_v45 = vpop.f32.mrf.mxu1  ;;  %v458_v46 = vpop.f32.mrf.mxu0  ;;  %v1730_v40 = vand.u32 4294901760, %v1057_v34 }
  0xea   :  { %v372_v53 = vadd.f32 %v371_v45, %v288_v47  ;;  %v298_v59 = vadd.f32 %v297_v43, %v213_v52 }
  0xeb   :  { %v373_v49 = vpop.f32.mrf.mxu1  ;;  %v460_v50 = vpop.f32.mrf.mxu0 }
  0xec   :  { %v374_v56 = vadd.f32 %v373_v49, %v290_v51  ;;  %v459_v60 = vadd.f32 %v458_v46, %v372_v53  ;;  %v1741_v46 = vsub.f32 %v1057_v34, %v1730_v40 }
  0xed   :  { %v380_v54 = vpop.f32.mrf.mxu1  ;;  %v465_v58 = vpop.f32.mrf.mxu0 }
  0xee   :  { %v381_v61 = vadd.f32 %v380_v54, %v296_v55  ;;  %v461_v63 = vadd.f32 %v460_v50, %v374_v56  ;;  %v1130_v51 = vand.u32 4294901760, %v1741_v46 }
  0xef   :  { %v382_v57 = vpop.f32.mrf.mxu1  ;;  %v467_v3 = vpop.f32.mrf.mxu0 }
  0xf0   :  { %v383_v0 = vadd.f32 %v382_v57, %v298_v59  ;;  %v466_v5 = vadd.f32 %v465_v58, %v381_v61  ;;  %v1131_v52 = vsub.f32 %v1741_v46, %v1130_v51 }
  0xf1   :  { %v539_v62 = vpop.f32.mrf.mxu1 }
  0xf2   :  { %v540_v1 = vadd.f32 %v539_v62, %v459_v60  ;;  %v468_v9 = vadd.f32 %v467_v3, %v383_v0  ;;  %v1132_v53 = vand.u32 4294901760, %v1131_v52 }
  0xf3   :  { %v541_v4 = vpop.f32.mrf.mxu1 }
  0xf4   :  { %v551_v6 = vmul.f32 1.442695, %v540_v1  ;;  %v542_v7 = vadd.f32 %v541_v4, %v461_v63 }
  0xf5   :  { %v546_v8 = vpop.f32.mrf.mxu1 }
  0xf6   :  { %1606 = vpow2.f32 %v551_v6  ;;  %v553_v10 = vmul.f32 1.442695, %v542_v7  ;;  %v547_v11 = vadd.f32 %v546_v8, %v466_v5 }
  0xf7   :  { %v548_v13 = vpop.f32.mrf.mxu1 }
  0xf8   :  { %1608 = vpow2.f32 %v553_v10  ;;  %v555_v14 = vmul.f32 1.442695, %v547_v11  ;;  %v549_v15 = vadd.f32 %v548_v13, %v468_v9 }
  0xfa   :  { %1610 = vpow2.f32 %v555_v14  ;;  %v557_v17 = vmul.f32 1.442695, %v549_v15 }
  0xfc   :  { %1612 = vpow2.f32 %v557_v17 }
 0x103   :  { %v1607_v20 = vpop.eup %1606 }
 0x104   :  { %v1697_v23 = vand.u32 4294901760, %v1607_v20 }
 0x105   :  { %v1609_v22 = vpop.eup %1608 }
 0x106   :  { %v1699_v24 = vand.u32 4294901760, %v1609_v22  ;;  %v1713_v31 = vsub.f32 %v1607_v20, %v1697_v23 }
 0x107   :  { %v1611_v25 = vpop.eup %1610 }
 0x108   :  { %v1704_v27 = vand.u32 4294901760, %v1611_v25  ;;  %v1710_v29 = vsub.f32 %v1609_v22, %v1699_v24  ;;  %v1728_v39 = vand.u32 4294901760, %v1713_v31 }
 0x109   :  { %v1613_v30 = vpop.eup %1612 }
 0x10a   :  { %v1715_v32 = vand.u32 4294901760, %v1613_v30  ;;  %v679_v33 = vsub.f32 %v1611_v25, %v1704_v27  ;;  %v1724_v38 = vand.u32 4294901760, %v1710_v29  ;;  %v693_v45 = vsub.f32 %v1713_v31, %v1728_v39 }
 0x10c   :  { %593 = vmatprep.subr.mxu0 %v1715_v32  ;;  %v673_v35 = vsub.f32 %v1613_v30, %v1715_v32  ;;  %v1721_v37 = vand.u32 4294901760, %v679_v33  ;;  %v687_v44 = vsub.f32 %v1710_v29, %v1724_v38  ;;  %v694_v50 = vand.u32 4294901760, %v693_v45 }
 0x10d   :  { %595 = vmatpush1.msra.mxu0 %v1704_v27 }
 0x10e   :  { %597 = vmatprep.subr.mxu0 %v1699_v24  ;;  %v674_v41 = vand.u32 4294901760, %v673_v35  ;;  %v681_v42 = vsub.f32 %v679_v33, %v1721_v37  ;;  %v688_v49 = vand.u32 4294901760, %v687_v44 }
 0x10f   :  { %599 = vmatpush1.msra.mxu0 %v1697_v23 }
 0x110   :  { %766 = vmatprep.subr.mxu0 %v673_v35  ;;  %638 = vmatmul.mubr.f32.vlgmr.msra.gmra.mxu0 %v637_v36  ;;  %v675_v43 = vsub.f32 %v673_v35, %v674_v41  ;;  %v682_v48 = vand.u32 4294901760, %v681_v42 }
 0x111   :  { %769 = vmatpush1.msra.mxu0 %v679_v33  ;;  %808 = vmatprep.mubr.f32.mxu0 %v1636_v2 }
 0x112   :  { %772 = vmatprep.subr.mxu0 %v1710_v29  ;;  %v676_v47 = vand.u32 4294901760, %v675_v43  ;;  %v1570_v43 = vlaneseq }
 0x113   :  { %775 = vmatpush1.msra.mxu0 %v1713_v31 }
 0x114   :  { %677 = vmatprep.subr.mxu1 %v676_v47  ;;  %926 = vmatprep.subr.mxu0 %v674_v41  ;;  %vm1584_vm3 = vcmp.lt.s32.totalorder %v1570_v43, 256 }
 0x115   :  { %683 = vmatpush1.msra.mxu1 %v682_v48  ;;  %811 = vmatmul.mubr.f32.vlgmr.msra.gmra.mxu0 %v1694_v19 }
 0x116   :  { %930 = vmatpush1.msra.mxu0 %v1721_v37  ;;  %689 = vmatprep.subr.mxu1 %v688_v49 }
 0x117   :  { %934 = vmatprep.subr.mxu0 %v1724_v38  ;;  %695 = vmatpush1.msra.mxu1 %v694_v50 }
 0x118   :  { %938 = vmatpush1.msra.mxu0 %v1728_v39  ;;  %730 = vmatmul.mubr.f32.vlgmr.msra.gmra.mxu1 %v1691_v18 }
 0x119   :  { %846 = vmatprep.subr.mxu1 %v1715_v32  ;;  %971 = vmatprep.mubr.f32.mxu0 %v1636_v2 }
 0x11a   :  { %1088 = vmatprep.subr.mxu0 %v1715_v32  ;;  %848 = vmatpush1.msra.mxu1 %v1704_v27 }
 0x11b   :  { %973 = vmatmul.mubr.f32.vlgmr.msra.gmra.mxu0 %v1691_v18  ;;  %850 = vmatprep.subr.mxu1 %v1699_v24 }
 0x11c   :  { %1090 = vmatpush1.msra.mxu0 %v1704_v27  ;;  %852 = vmatpush1.msra.mxu1 %v1697_v23 }
 0x11d   :  { %1092 = vmatprep.subr.mxu0 %v1699_v24  ;;  %885 = vmatprep.mubr.f32.mxu1 %v1636_v2 }
 0x11e   :  { %1094 = vmatpush1.msra.mxu0 %v1697_v23  ;;  %889 = vmatmul.mubr.f32.vlgmr.msra.gmra.mxu1 %v635_v21 }
 0x11f   :  { %1008 = vmatprep.subr.mxu1 %v1715_v32  ;;  %1127 = vmatprep.mubr.f32.mxu0 %v1636_v2 }
 0x120   :  { %1261 = vmatprep.subr.mxu0 %v673_v35  ;;  %1010 = vmatpush1.msra.mxu1 %v1704_v27 }
 0x121   :  { %1133 = vmatmul.mubr.f32.vlgmr.msra.gmra.mxu0 %v1132_v53  ;;  %1012 = vmatprep.subr.mxu1 %v1699_v24 }
 0x122   :  { %1264 = vmatpush1.msra.mxu0 %v679_v33  ;;  %1014 = vmatpush1.msra.mxu1 %v1697_v23 }
 0x123   :  { %1267 = vmatprep.subr.mxu0 %v1710_v29  ;;  %1047 = vmatprep.mubr.f32.mxu1 %v1636_v2 }
 0x124   :  { %1270 = vmatpush1.msra.mxu0 %v1713_v31  ;;  %1049 = vmatmul.mubr.f32.vlgmr.msra.gmra.mxu1 %v1691_v18 }
 0x125   :  { %1172 = vmatprep.subr.mxu1 %v676_v47  ;;  %1303 = vmatprep.mubr.f32.mxu0 %v1636_v2 }
 0x126   :  { %1421 = vmatprep.subr.mxu0 %v674_v41  ;;  %1178 = vmatpush1.msra.mxu1 %v682_v48  ;;  %v1637_v41 = vmov 1966171168  }
 0x127   :  { %1306 = vmatmul.mubr.f32.vlgmr.msra.gmra.mxu0 %v1741_v46  ;;  %1184 = vmatprep.subr.mxu1 %v688_v49  ;;  %v1568_v42 = vunpack.c.l.s4 %v1637_v41  ;;  %v1571_v49 = vshrl.u32 %v1570_v43, 7 }
 0x128   :  { %1425 = vmatpush1.msra.mxu0 %v1721_v37  ;;  %1190 = vmatpush1.msra.mxu1 %v694_v50 }
 0x129   :  { %1429 = vmatprep.subr.mxu0 %v1724_v38  ;;  %1223 = vmatprep.mubr.f32.mxu1 %v1636_v2  ;;  %v1569_v48 = vunpack.c.0.s8 %v1568_v42 }
 0x12a   :  { %1433 = vmatpush1.msra.mxu0 %v1728_v39  ;;  %1225 = vmatmul.mubr.f32.vlgmr.msra.gmra.mxu1 %v1730_v40 }
 0x12b   :  { %1341 = vmatprep.subr.mxu1 %v1715_v32  ;;  %1380 = vmatprep.mubr.f32.mxu1 %v1636_v2  ;;  %v1572_v53 = vsub.s32 %v1569_v48, %v1571_v49 }
 0x12c   :  { %1343 = vmatpush1.msra.mxu1 %v1704_v27  ;;  %1466 = vmatprep.mubr.f32.mxu0 %v1636_v2 }
 0x12d   :  { %1345 = vmatprep.subr.mxu1 %v1699_v24  ;;  %1468 = vmatmul.mubr.f32.vlgmr.msra.gmra.mxu0 %v1730_v40 }
 0x12e   :  { %1347 = vmatpush1.msra.mxu1 %v1697_v23 }
 0x12f   :  { %1384 = vmatmul.mubr.f32.vlgmr.msra.gmra.mxu1 %v1130_v51  ;;  %1503 = vmatprep.subr.mxu1 %v1715_v32 }
 0x130   :  { %1505 = vmatpush1.msra.mxu1 %v1704_v27  ;;  %1542 = vmatprep.mubr.f32.mxu1 %v1636_v2 }
 0x131   :  { %1507 = vmatprep.subr.mxu1 %v1699_v24 }
 0x132   :  { %1509 = vmatpush1.msra.mxu1 %v1697_v23 }
 0x133   :  { %1544 = vmatmul.mubr.f32.vlgmr.msra.gmra.mxu1 %v1730_v40 }
 0x1d0   :  { %v639_v54 = vpop.f32.mrf.mxu0 }
 0x1d2   :  { %v641_v55 = vpop.f32.mrf.mxu0 }
 0x1d5   :  { %v812_v56 = vpop.f32.mrf.mxu0 }
 0x1d7   :  { %v814_v57 = vpop.f32.mrf.mxu0 }
 0x1d8   :  { %v731_v58 = vpop.f32.mrf.mxu1 }
 0x1d9   :  { %v732_v3 = vadd.f32 %v731_v58, %v639_v54 }
 0x1da   :  { %v733_v59 = vpop.f32.mrf.mxu1 }
 0x1db   :  { %v974_v60 = vpop.f32.mrf.mxu0  ;;  %v734_v4 = vadd.f32 %v733_v59, %v641_v55  ;;  %v813_v7 = vadd.f32 %v812_v56, %v732_v3 }
 0x1dd   :  { %v976_v61 = vpop.f32.mrf.mxu0  ;;  %v815_v8 = vadd.f32 %v814_v57, %v734_v4 }
 0x1de   :  { %v890_v62 = vpop.f32.mrf.mxu1 }
 0x1df   :  { %v891_v12 = vadd.f32 %v890_v62, %v813_v7 }
 0x1e0   :  { %v892_v63 = vpop.f32.mrf.mxu1 }
 0x1e1   :  { %v1134_v0 = vpop.f32.mrf.mxu0  ;;  %v893_v16 = vadd.f32 %v892_v63, %v815_v8  ;;  %v975_v20 = vadd.f32 %v974_v60, %v891_v12 }
 0x1e3   :  { %v1136_v1 = vpop.f32.mrf.mxu0  ;;  %v977_v23 = vadd.f32 %v976_v61, %v893_v16 }
 0x1e4   :  { %v1050_v2 = vpop.f32.mrf.mxu1 }
 0x1e5   :  { %v1051_v28 = vadd.f32 %v1050_v2, %v975_v20 }
 0x1e6   :  { %v1052_v5 = vpop.f32.mrf.mxu1 }
 0x1e7   :  { %v1307_v6 = vpop.f32.mrf.mxu0  ;;  %v1053_v32 = vadd.f32 %v1052_v5, %v977_v23 }
 0x1e9   :  { %v1309_v11 = vpop.f32.mrf.mxu0 }
 0x1ea   :  { %v1226_v9 = vpop.f32.mrf.mxu1 }
 0x1eb   :  { %v1227_v10 = vadd.f32 %v1226_v9, %v1134_v0 }
 0x1ec   :  { %v1228_v13 = vpop.f32.mrf.mxu1 }
 0x1ed   :  { %v1229_v14 = vadd.f32 %v1228_v13, %v1136_v1  ;;  %v1308_v15 = vadd.f32 %v1307_v6, %v1227_v10  ;;  %v1469_v19 = vpop.f32.mrf.mxu0 }
 0x1ef   :  { %v1310_v17 = vadd.f32 %v1309_v11, %v1229_v14  ;;  %v1385_v18 = vpop.f32.mrf.mxu1  ;;  %v1471_v26 = vpop.f32.mrf.mxu0 }
 0x1f0   :  { %v1386_v21 = vadd.f32 %v1385_v18, %v1308_v15 }
 0x1f1   :  { %v1387_v22 = vpop.f32.mrf.mxu1 }
 0x1f2   :  { %v1388_v24 = vadd.f32 %v1387_v22, %v1310_v17  ;;  %v1470_v25 = vadd.f32 %v1469_v19, %v1386_v21 }
 0x1f3   :  { %v1545_v27 = vpop.f32.mrf.mxu1 }
 0x1f4   :  { %v1472_v29 = vadd.f32 %v1471_v26, %v1388_v24  ;;  %v1546_v30 = vadd.f32 %v1545_v27, %v1470_v25 }
 0x1f5   :  { %v1547_v31 = vpop.f32.mrf.mxu1 }
 0x1f6   :  { %v1550_v33 = vmul.f32 %v1546_v30, %v1051_v28  ;;  %v1548_v34 = vadd.f32 %v1547_v31, %v1472_v29 }
 0x1f8   :  { %v1552_v35 = vrot.slane %v1550_v33, 4  ;;  %v1551_v36 = vmul.f32 %v1548_v34, %v1053_v32 }
 0x1fa   :  { %v1553_v37 = vadd.f32 %v1552_v35, %v1550_v33  ;;  %v1558_v38 = vrot.slane %v1551_v36, 4 }
 0x1fc   :  { %v1554_v39 = vrot.slane %v1553_v37, 2  ;;  %v1559_v40 = vadd.f32 %v1558_v38, %v1551_v36 }
 0x1fe   :  { %v1555_v44 = vadd.f32 %v1554_v39, %v1553_v37  ;;  %v1560_v45 = vrot.slane %v1559_v40, 2 }
 0x200   :  { %v1556_v46 = vrot.slane %v1555_v44, 1  ;;  %v1561_v47 = vadd.f32 %v1560_v45, %v1559_v40 }
 0x202   :  { %v1562_v50 = vrot.slane %v1561_v47, 1  ;;  %v1557_v51 = vadd.f32 %v1556_v46, %v1555_v44 }
 0x204   :  { %v1563_v52 = vadd.f32 %v1562_v50, %v1561_v47 }
 0x206   :  { %v1566_v54 = vcombine.low %v1557_v51, %v1563_v52 }
 0x208   :  { %v1573_v55 = vrot.slane %v1566_v54, %v1572_v53 }
 0x20a   :  { %v1580_v56 = vrot.slane %v1573_v55, %v1572_v53 }
 0x20c   :  { %1586 = vst.msk [vmem:[#allocation2] sm:$0x3] %vm1584_vm3, %v1580_v56 }
 0x20d   :  { %1625 = shalt.err (!%p1622_p4)
}
 0x20e   :  { %1596 = dma.vmem_to_hbm [thread:$0]  %s1594_s22, 32, %s1801_s4, [#allocation3]  }
 0x20f   :  { %1634 = dma.done.wait [#allocation3], 32  }
 0x210   :  { %1635 = vsyncadd [#allocation3], 4294967264 }
 0x211   :  { %1600 = vsyncpa [#allocation3], 1 }

</bundles_post_ra>
